<compile_context>
chip_gen: v7x
topology: tpu7x:2x2x1
jax: 0.10.0
libtpu: 0.0.40
codegen_flags: <defaults>
</compile_context>

<pallas_src>
import functools

import jax
import jax.numpy as jnp
from jax.experimental import pallas as pl
from jax.experimental.pallas import tpu as pltpu

_SQRT_HALF = 0.7071067811865476
_BN_EPS = 1e-5

# Abramowitz & Stegun 7.1.26 erf approximation (max abs error ~1.5e-7), built only from
# mul/add/div/exp/where so it is guaranteed to lower on the Mosaic TPU backend.
_A1, _A2, _A3, _A4, _A5 = 0.254829592, -0.284496736, 1.421413741, -1.453152027, 1.061405429
_P = 0.3275911


def _erf_approx(x):
    ax = jnp.abs(x)
    t = 1.0 / (1.0 + _P * ax)
    poly = ((((_A5 * t + _A4) * t + _A3) * t + _A2) * t + _A1) * t
    y = 1.0 - poly * jnp.exp(-ax * ax)
    return jnp.where(x < 0.0, -y, y)


def _gelu_exact(x):
    # PyTorch nn.GELU() default (approximate='none'): 0.5 * x * (1 + erf(x / sqrt(2)))
    return 0.5 * x * (1.0 + _erf_approx(x * _SQRT_HALF))


def conv_stats_kernel(x_ref, w_ref, y_ref, sum_ref, sq_ref, a_pad, taps, *,
                      dilation, left, length, c_in, k_taps):
    # x_ref:   (1, C_in, L)            one batch element
    # w_ref:   (C_out, K*C_in)         taps folded into the contraction axis (bf16)
    # y_ref:   (1, C_out, L)           unnormalized conv output (f32)
    # sum_ref: (C_out, 1)              per-channel sum  (accumulated over the batch grid)
    # sq_ref:  (C_out, 1)              per-channel sum of squares
    # a_pad:   (C_in, L + total_pad)   VMEM scratch, GELU(x) with the 'same' halo
    # taps:    (K*C_in, L)             VMEM scratch, im2col slab (K shifted windows)
    n = pl.program_id(0)

    @pl.when(n == 0)
    def _():
        a_pad[...] = jnp.zeros_like(a_pad)      # zero halo once; GELU(0) == 0
        sum_ref[...] = jnp.zeros_like(sum_ref)
        sq_ref[...] = jnp.zeros_like(sq_ref)

    # GELU once, stored to VMEM scratch in the matmul dtype; taps below are ref slices.
    a_pad[:, pl.ds(left, length)] = _gelu_exact(
        x_ref[0].astype(jnp.float32)).astype(a_pad.dtype)

    # im2col over taps: stack the K shifted windows along sublanes (static offsets).
    for kk in range(k_taps):
        taps[pl.ds(kk * c_in, c_in), :] = a_pad[:, pl.ds(kk * dilation, length)]

    # One MXU matmul, contraction = K*C_in, f32 accumulation.
    y = jnp.dot(w_ref[...], taps[...], preferred_element_type=jnp.float32)  # (C_out, L)
    y_ref[0] = y.astype(y_ref.dtype)

    # One-pass BN partials (no mask needed: every output column is a real sample).
    sum_ref[...] += jnp.sum(y, axis=1, keepdims=True)
    sq_ref[...] += jnp.sum(y * y, axis=1, keepdims=True)


def bn_apply_kernel(y_ref, sum_ref, sq_ref, gamma_ref, beta_ref, out_ref, *, inv_count):
    mean = sum_ref[...] * inv_count                         # (C_out, 1)
    var = sq_ref[...] * inv_count - mean * mean             # E[y^2] - mean^2 (biased)
    scale = gamma_ref[...] * jax.lax.rsqrt(var + _BN_EPS)
    shift = beta_ref[...] - mean * scale
    out_ref[0] = (y_ref[0] * scale + shift).astype(out_ref.dtype)


def conv_block(x, weight, gamma, beta, *, dilation=1, matmul_dtype=jnp.bfloat16):
    """x: (N, C_in, L); weight: (C_out, C_in, K) as in PyTorch Conv1d (bias=False)."""
    n, c_in, length = x.shape
    c_out, _, k = weight.shape

    # PyTorch padding='same' (stride 1): total = d*(K-1), left = total//2, rest right.
    total_pad = dilation * (k - 1)
    left = total_pad // 2

    # Fold taps into the contraction: W2[co, kk*C_in + ci] = weight[co, ci, kk].
    w2 = jnp.transpose(weight, (0, 2, 1)).reshape(c_out, k * c_in).astype(matmul_dtype)
    gamma2 = gamma.astype(jnp.float32).reshape(c_out, 1)
    beta2 = beta.astype(jnp.float32).reshape(c_out, 1)

    # Pass 1: GELU + dilated conv + per-channel sum / sum-of-squares partials.
    kern1 = functools.partial(conv_stats_kernel, dilation=dilation, left=left,
                              length=length, c_in=c_in, k_taps=k)
    y, ysum, ysq = pl.pallas_call(
        kern1,
        grid=(n,),
        out_shape=(jax.ShapeDtypeStruct((n, c_out, length), jnp.float32),
                   jax.ShapeDtypeStruct((c_out, 1), jnp.float32),
                   jax.ShapeDtypeStruct((c_out, 1), jnp.float32)),
        in_specs=[pl.BlockSpec((1, c_in, length), lambda b: (b, 0, 0)),
                  pl.BlockSpec((c_out, k * c_in), lambda b: (0, 0))],
        out_specs=(pl.BlockSpec((1, c_out, length), lambda b: (b, 0, 0)),
                   pl.BlockSpec((c_out, 1), lambda b: (0, 0)),
                   pl.BlockSpec((c_out, 1), lambda b: (0, 0))),
        scratch_shapes=[pltpu.VMEM((c_in, length + total_pad), matmul_dtype),
                        pltpu.VMEM((k * c_in, length), matmul_dtype)],
        compiler_params=pltpu.CompilerParams(dimension_semantics=("arbitrary",)),
    )(x, w2)

    # Pass 2: finalize the batch statistics and normalize.
    kern2 = functools.partial(bn_apply_kernel, inv_count=1.0 / float(n * length))
    out = pl.pallas_call(
        kern2,
        grid=(n,),
        out_shape=jax.ShapeDtypeStruct((n, c_out, length), x.dtype),
        in_specs=[pl.BlockSpec((1, c_out, length), lambda b: (b, 0, 0)),
                  pl.BlockSpec((c_out, 1), lambda b: (0, 0)),
                  pl.BlockSpec((c_out, 1), lambda b: (0, 0)),
                  pl.BlockSpec((c_out, 1), lambda b: (0, 0)),
                  pl.BlockSpec((c_out, 1), lambda b: (0, 0))],
        out_specs=pl.BlockSpec((1, c_out, length), lambda b: (b, 0, 0)),
        compiler_params=pltpu.CompilerParams(dimension_semantics=("parallel",)),
    )(y, ysum, ysq, gamma2, beta2)
    return out


def conv_block_ref(x, weight, gamma, beta, *, dilation=1,
                   matmul_dtype=jnp.float32, exact_erf=True):
    """Pure-JAX reference (XLA ops). matmul_dtype rounds the conv operands like the kernel."""
    erf = jax.lax.erf if exact_erf else _erf_approx
    a = 0.5 * x * (1.0 + erf(x * _SQRT_HALF))
    a = a.astype(matmul_dtype).astype(jnp.float32)
    w = weight.astype(matmul_dtype).astype(jnp.float32)
    _, _, k = weight.shape
    total_pad = dilation * (k - 1)
    left = total_pad // 2
    a_pad = jnp.pad(a, ((0, 0), (0, 0), (left, total_pad - left)))
    y = jax.lax.conv_general_dilated(
        a_pad, w, window_strides=(1,), padding="VALID",
        rhs_dilation=(dilation,), dimension_numbers=("NCH", "OIH", "NCH"))
    mean = jnp.mean(y, axis=(0, 2), keepdims=True)
    var = jnp.mean(jnp.square(y - mean), axis=(0, 2), keepdims=True)
    return ((y - mean) * jax.lax.rsqrt(var + _BN_EPS) * gamma.reshape(1, -1, 1)
            + beta.reshape(1, -1, 1))


if __name__ == "__main__":
    # ConvBlock(channels_in=4, channels_out=8, kernel_size=3, dilation_rate=2, bn_gamma=None)
    N, C_IN, C_OUT, L, K, DIL = 2, 4, 8, 16, 3, 2

    key = jax.random.PRNGKey(0)
    kx, kw = jax.random.split(key)
    x = jax.random.normal(kx, (N, C_IN, L), jnp.float32)
    weight = jax.random.normal(kw, (C_OUT, C_IN, K), jnp.float32) * 0.2  # Conv1d, bias=False
    gamma = jnp.ones((C_OUT,), jnp.float32)   # BatchNorm1d default weight (bn_gamma=None)
    beta = jnp.zeros((C_OUT,), jnp.float32)   # BatchNorm1d default bias

    out = jax.block_until_ready(conv_block(x, weight, gamma, beta, dilation=DIL))
    assert out.shape == (N, C_OUT, L), out.shape

    # Tight check vs a reference with matching (bf16-rounded) matmul operands.
    ref_matched = conv_block_ref(x, weight, gamma, beta, dilation=DIL,
                                 matmul_dtype=jnp.bfloat16, exact_erf=False)
    err_m = float(jnp.max(jnp.abs(out - ref_matched)))
    assert jnp.allclose(out, ref_matched, rtol=2e-3, atol=2e-3), err_m

    # Loose check vs the full-f32 exact-erf PyTorch-semantics reference (bf16 MXU operands
    # are a documented precision choice; accumulation stays f32).
    ref_f32 = conv_block_ref(x, weight, gamma, beta, dilation=DIL,
                             matmul_dtype=jnp.float32, exact_erf=True)
    err_f = float(jnp.max(jnp.abs(out - ref_f32)))
    assert jnp.allclose(out, ref_f32, rtol=3e-2, atol=3e-2), err_f

    print("KERNEL_OK")
</pallas_src>

<mosaic_0001>
module attributes {stable_mosaic.version = 11 : i64} {
  func.func @conv_stats_kernel(%arg0: i32, %arg1: memref<1x4x16xf32, #tpu.memory_space<vmem>>, %arg2: memref<8x12xbf16, #tpu.memory_space<vmem>>, %arg3: memref<1x8x16xf32, #tpu.memory_space<vmem>>, %arg4: memref<8x1xf32, #tpu.memory_space<vmem>>, %arg5: memref<8x1xf32, #tpu.memory_space<vmem>>, %arg6: memref<4x20xbf16, #tpu.memory_space<vmem>>, %arg7: memref<12x16xbf16, #tpu.memory_space<vmem>>) attributes {dimension_semantics = [#tpu.dimension_semantics<arbitrary>], iteration_bounds = array<i64: 2>, scalar_prefetch = 0 : i64, scratch_operands = 2 : i64, tpu.core_type = #tpu.core_type<tc>, window_params = [{transform_indices = @transform_0, window_bounds = array<i64: 1, 4, 16>}, {pipeline_mode = #tpu.pipeline_mode<synchronous>, transform_indices = @transform_1, window_bounds = array<i64: 8, 12>}, {transform_indices = @transform_2, window_bounds = array<i64: 1, 8, 16>}, {pipeline_mode = #tpu.pipeline_mode<synchronous>, transform_indices = @transform_3, window_bounds = array<i64: 8, 1>}, {pipeline_mode = #tpu.pipeline_mode<synchronous>, transform_indices = @transform_4, window_bounds = array<i64: 8, 1>}]} {
    %c0_i32 = arith.constant 0 : i32
    %0 = arith.cmpi eq, %arg0, %c0_i32 : i32
    %1 = arith.extui %0 : i1 to i32
    %c0_i32_0 = arith.constant 0 : i32
    %2 = arith.cmpi ne, %1, %c0_i32_0 : i32
    scf.if %2 {
      %cst_46 = arith.constant 0.000000e+00 : bf16
      %70 = vector.broadcast %cst_46 : bf16 to vector<4x20xbf16>
      %c0_47 = arith.constant 0 : index
      %c0_48 = arith.constant 0 : index
      %71 = vector.load %arg6[%c0_47, %c0_48] : memref<4x20xbf16, #tpu.memory_space<vmem>>, vector<4x20xbf16>
      tpu.vector_store %arg6[%c0_47, %c0_48], %70 {strides = array<i32>} : memref<4x20xbf16, #tpu.memory_space<vmem>>, vector<4x20xbf16>,
      %cst_49 = arith.constant 0.000000e+00 : f32
      %72 = vector.broadcast %cst_49 : f32 to vector<8x1xf32>
      %c0_50 = arith.constant 0 : index
      %c0_51 = arith.constant 0 : index
      %73 = vector.load %arg4[%c0_50, %c0_51] : memref<8x1xf32, #tpu.memory_space<vmem>>, vector<8x1xf32>
      tpu.vector_store %arg4[%c0_50, %c0_51], %72 {strides = array<i32>} : memref<8x1xf32, #tpu.memory_space<vmem>>, vector<8x1xf32>,
      %cst_52 = arith.constant 0.000000e+00 : f32
      %74 = vector.broadcast %cst_52 : f32 to vector<8x1xf32>
      %c0_53 = arith.constant 0 : index
      %c0_54 = arith.constant 0 : index
      %75 = vector.load %arg5[%c0_53, %c0_54] : memref<8x1xf32, #tpu.memory_space<vmem>>, vector<8x1xf32>
      tpu.vector_store %arg5[%c0_53, %c0_54], %74 {strides = array<i32>} : memref<8x1xf32, #tpu.memory_space<vmem>>, vector<8x1xf32>,
    } else {
    }
    %c0 = arith.constant 0 : index
    %c0_1 = arith.constant 0 : index
    %c0_2 = arith.constant 0 : index
    %3 = vector.load %arg1[%c0, %c0_1, %c0_2] : memref<1x4x16xf32, #tpu.memory_space<vmem>>, vector<1x4x16xf32>
    %4 = vector.shape_cast %3 : vector<1x4x16xf32> to vector<4x16xf32>
    %cst = arith.constant 5.000000e-01 : f32
    %5 = vector.broadcast %cst : f32 to vector<4x16xf32>
    %6 = arith.mulf %5, %4 : vector<4x16xf32>
    %cst_3 = arith.constant 0.707106769 : f32
    %7 = vector.broadcast %cst_3 : f32 to vector<4x16xf32>
    %8 = arith.mulf %4, %7 : vector<4x16xf32>
    %9 = math.absf %8 : vector<4x16xf32>
    %cst_4 = arith.constant 0.327591091 : f32
    %10 = vector.broadcast %cst_4 : f32 to vector<4x16xf32>
    %11 = arith.mulf %10, %9 : vector<4x16xf32>
    %cst_5 = arith.constant 1.000000e+00 : f32
    %12 = vector.broadcast %cst_5 : f32 to vector<4x16xf32>
    %13 = arith.addf %12, %11 : vector<4x16xf32>
    %cst_6 = arith.constant 1.000000e+00 : f32
    %14 = vector.broadcast %cst_6 : f32 to vector<4x16xf32>
    %15 = arith.divf %14, %13 : vector<4x16xf32>
    %cst_7 = arith.constant 1.06140542 : f32
    %16 = vector.broadcast %cst_7 : f32 to vector<4x16xf32>
    %17 = arith.mulf %16, %15 : vector<4x16xf32>
    %cst_8 = arith.constant -1.45315206 : f32
    %18 = vector.broadcast %cst_8 : f32 to vector<4x16xf32>
    %19 = arith.addf %17, %18 : vector<4x16xf32>
    %20 = arith.mulf %19, %15 : vector<4x16xf32>
    %cst_9 = arith.constant 1.42141378 : f32
    %21 = vector.broadcast %cst_9 : f32 to vector<4x16xf32>
    %22 = arith.addf %20, %21 : vector<4x16xf32>
    %23 = arith.mulf %22, %15 : vector<4x16xf32>
    %cst_10 = arith.constant -0.284496725 : f32
    %24 = vector.broadcast %cst_10 : f32 to vector<4x16xf32>
    %25 = arith.addf %23, %24 : vector<4x16xf32>
    %26 = arith.mulf %25, %15 : vector<4x16xf32>
    %cst_11 = arith.constant 0.254829586 : f32
    %27 = vector.broadcast %cst_11 : f32 to vector<4x16xf32>
    %28 = arith.addf %26, %27 : vector<4x16xf32>
    %29 = arith.mulf %28, %15 : vector<4x16xf32>
    %cst_12 = arith.constant 0.000000e+00 : f32
    %30 = vector.broadcast %cst_12 : f32 to vector<4x16xf32>
    %31 = arith.subf %30, %9 : vector<4x16xf32>
    %32 = arith.mulf %31, %9 : vector<4x16xf32>
    %33 = math.exp %32 : vector<4x16xf32>
    %34 = arith.mulf %29, %33 : vector<4x16xf32>
    %cst_13 = arith.constant 1.000000e+00 : f32
    %35 = vector.broadcast %cst_13 : f32 to vector<4x16xf32>
    %36 = arith.subf %35, %34 : vector<4x16xf32>
    %cst_14 = arith.constant 0.000000e+00 : f32
    %37 = vector.broadcast %cst_14 : f32 to vector<4x16xf32>
    %38 = arith.cmpf olt, %8, %37 : vector<4x16xf32>
    %cst_15 = arith.constant 0.000000e+00 : f32
    %39 = vector.broadcast %cst_15 : f32 to vector<4x16xf32>
    %40 = arith.subf %39, %36 : vector<4x16xf32>
    %41 = arith.select %38, %40, %36 : vector<4x16xi1>, vector<4x16xf32>
    %cst_16 = arith.constant 1.000000e+00 : f32
    %42 = vector.broadcast %cst_16 : f32 to vector<4x16xf32>
    %43 = arith.addf %42, %41 : vector<4x16xf32>
    %44 = arith.mulf %6, %43 : vector<4x16xf32>
    %45 = arith.truncf %44 : vector<4x16xf32> to vector<4x16xbf16>
    %c0_17 = arith.constant 0 : index
    %c2 = arith.constant 2 : index
    %46 = vector.load %arg6[%c0_17, %c2] : memref<4x20xbf16, #tpu.memory_space<vmem>>, vector<4x16xbf16>
    tpu.vector_store %arg6[%c0_17, %c2], %45 {strides = array<i32>} : memref<4x20xbf16, #tpu.memory_space<vmem>>, vector<4x16xbf16>,
    %c0_18 = arith.constant 0 : index
    %c0_19 = arith.constant 0 : index
    %47 = vector.load %arg6[%c0_18, %c0_19] : memref<4x20xbf16, #tpu.memory_space<vmem>>, vector<4x16xbf16>
    %c0_20 = arith.constant 0 : index
    %c0_21 = arith.constant 0 : index
    %48 = vector.load %arg7[%c0_20, %c0_21] : memref<12x16xbf16, #tpu.memory_space<vmem>>, vector<4x16xbf16>
    tpu.vector_store %arg7[%c0_20, %c0_21], %47 {strides = array<i32>} : memref<12x16xbf16, #tpu.memory_space<vmem>>, vector<4x16xbf16>,
    %c0_22 = arith.constant 0 : index
    %c2_23 = arith.constant 2 : index
    %49 = vector.load %arg6[%c0_22, %c2_23] : memref<4x20xbf16, #tpu.memory_space<vmem>>, vector<4x16xbf16>
    %c4 = arith.constant 4 : index
    %c0_24 = arith.constant 0 : index
    %50 = vector.load %arg7[%c4, %c0_24] : memref<12x16xbf16, #tpu.memory_space<vmem>>, vector<4x16xbf16>
    tpu.vector_store %arg7[%c4, %c0_24], %49 {strides = array<i32>} : memref<12x16xbf16, #tpu.memory_space<vmem>>, vector<4x16xbf16>,
    %c0_25 = arith.constant 0 : index
    %c4_26 = arith.constant 4 : index
    %51 = vector.load %arg6[%c0_25, %c4_26] : memref<4x20xbf16, #tpu.memory_space<vmem>>, vector<4x16xbf16>
    %c8 = arith.constant 8 : index
    %c0_27 = arith.constant 0 : index
    %52 = vector.load %arg7[%c8, %c0_27] : memref<12x16xbf16, #tpu.memory_space<vmem>>, vector<4x16xbf16>
    tpu.vector_store %arg7[%c8, %c0_27], %51 {strides = array<i32>} : memref<12x16xbf16, #tpu.memory_space<vmem>>, vector<4x16xbf16>,
    %c0_28 = arith.constant 0 : index
    %c0_29 = arith.constant 0 : index
    %53 = vector.load %arg2[%c0_28, %c0_29] : memref<8x12xbf16, #tpu.memory_space<vmem>>, vector<8x12xbf16>
    %c0_30 = arith.constant 0 : index
    %c0_31 = arith.constant 0 : index
    %54 = vector.load %arg7[%c0_30, %c0_31] : memref<12x16xbf16, #tpu.memory_space<vmem>>, vector<12x16xbf16>
    %cst_32 = arith.constant dense<0.000000e+00> : vector<8x16xf32>
    %55 = tpu.matmul %53, %54, %cst_32 {dimension_numbers = #tpu.dot_dimension_numbers<[1], [0], [0], [1], [0, 0, 1, 1], [], []>} : vector<8x12xbf16>, vector<12x16xbf16>, vector<8x16xf32> -> vector<8x16xf32>
    %c0_33 = arith.constant 0 : index
    %c0_34 = arith.constant 0 : index
    %c0_35 = arith.constant 0 : index
    %56 = vector.load %arg3[%c0_33, %c0_34, %c0_35] : memref<1x8x16xf32, #tpu.memory_space<vmem>>, vector<1x8x16xf32>
    %57 = vector.shape_cast %56 : vector<1x8x16xf32> to vector<8x16xf32>
    %58 = vector.shape_cast %55 : vector<8x16xf32> to vector<1x8x16xf32>
    tpu.vector_store %arg3[%c0_33, %c0_34, %c0_35], %58 {strides = array<i32>} : memref<1x8x16xf32, #tpu.memory_space<vmem>>, vector<1x8x16xf32>,
    %c0_36 = arith.constant 0 : index
    %c0_37 = arith.constant 0 : index
    %59 = vector.load %arg4[%c0_36, %c0_37] : memref<8x1xf32, #tpu.memory_space<vmem>>, vector<8x1xf32>
    %cst_38 = arith.constant dense<0.000000e+00> : vector<8xf32>
    %60 = vector.multi_reduction <add>, %55, %cst_38 [1] : vector<8x16xf32> to vector<8xf32>
    %61 = vector.shape_cast %60 : vector<8xf32> to vector<8x1xf32>
    %62 = arith.addf %59, %61 : vector<8x1xf32>
    %c0_39 = arith.constant 0 : index
    %c0_40 = arith.constant 0 : index
    %63 = vector.load %arg4[%c0_39, %c0_40] : memref<8x1xf32, #tpu.memory_space<vmem>>, vector<8x1xf32>
    tpu.vector_store %arg4[%c0_39, %c0_40], %62 {strides = array<i32>} : memref<8x1xf32, #tpu.memory_space<vmem>>, vector<8x1xf32>,
    %c0_41 = arith.constant 0 : index
    %c0_42 = arith.constant 0 : index
    %64 = vector.load %arg5[%c0_41, %c0_42] : memref<8x1xf32, #tpu.memory_space<vmem>>, vector<8x1xf32>
    %65 = arith.mulf %55, %55 : vector<8x16xf32>
    %cst_43 = arith.constant dense<0.000000e+00> : vector<8xf32>
    %66 = vector.multi_reduction <add>, %65, %cst_43 [1] : vector<8x16xf32> to vector<8xf32>
    %67 = vector.shape_cast %66 : vector<8xf32> to vector<8x1xf32>
    %68 = arith.addf %64, %67 : vector<8x1xf32>
    %c0_44 = arith.constant 0 : index
    %c0_45 = arith.constant 0 : index
    %69 = vector.load %arg5[%c0_44, %c0_45] : memref<8x1xf32, #tpu.memory_space<vmem>>, vector<8x1xf32>
    tpu.vector_store %arg5[%c0_44, %c0_45], %68 {strides = array<i32>} : memref<8x1xf32, #tpu.memory_space<vmem>>, vector<8x1xf32>,
    return
  }
  func.func @transform_0(%arg0: i32) -> (i32, i32, i32) {
    %c0_i32 = arith.constant 0 : i32
    %c0_i32_0 = arith.constant 0 : i32
    %c0_i32_1 = arith.constant 0 : i32
    return %arg0, %c0_i32, %c0_i32_0 : i32, i32, i32
  }
  func.func @transform_1(%arg0: i32) -> (i32, i32) {
    %c0_i32 = arith.constant 0 : i32
    %c0_i32_0 = arith.constant 0 : i32
    %c0_i32_1 = arith.constant 0 : i32
    return %c0_i32, %c0_i32_0 : i32, i32
  }
  func.func @transform_2(%arg0: i32) -> (i32, i32, i32) {
    %c0_i32 = arith.constant 0 : i32
    %c0_i32_0 = arith.constant 0 : i32
    %c0_i32_1 = arith.constant 0 : i32
    return %arg0, %c0_i32, %c0_i32_0 : i32, i32, i32
  }
  func.func @transform_3(%arg0: i32) -> (i32, i32) {
    %c0_i32 = arith.constant 0 : i32
    %c0_i32_0 = arith.constant 0 : i32
    %c0_i32_1 = arith.constant 0 : i32
    return %c0_i32, %c0_i32_0 : i32, i32
  }
  func.func @transform_4(%arg0: i32) -> (i32, i32) {
    %c0_i32 = arith.constant 0 : i32
    %c0_i32_0 = arith.constant 0 : i32
    %c0_i32_1 = arith.constant 0 : i32
    return %c0_i32, %c0_i32_0 : i32, i32
  }
}

</mosaic_0001>

<bundles_post_ra>
// kernel: tpu_custom_call.1
= control target key start
LH: loop header
LB: loop body
LE: loop exit
PB: predicated region body
PF: predicated region fallthrough
CT: control target
= control target key end

     0   :  { %10 = vsyncpa [#allocation5], 0  ;;  %s966_s0 = inlined_call_operand.hbm [shape: f32[2,4,16], index: 0, kind: input, shape index: {}]   ;;  %s967_s1 = inlined_call_operand.hbm [shape: bf16[8,12], index: 1, kind: input, shape index: {}]   ;;  %s968_s2 = inlined_call_operand.hbm [shape: f32[2,8,16], index: 2, kind: output, shape index: {0}]   ;;  %s969_s3 = inlined_call_operand.vmem [shape: f32[8,1], index: 3, kind: output, shape index: {1}]   ;;  %s970_s4 = inlined_call_operand.vmem [shape: f32[8,1], index: 4, kind: output, shape index: {2}]  }
   0x1   :  { %12 = vsyncpa [#allocation5 + $0x1], 0 }
   0x2   :  { %13 = vsyncpa [#allocation8], 0 }
   0x3   :  { %14 = vsyncpa [#allocation6], 0 }
   0x4   :  { %16 = vsyncpa [#allocation6 + $0x1], 0  ;;  %s745_s15 = smov 0   ;;  %s747_s16 = smov 0  }
   0x5   :  { %s749_s17 = smov 0   ;;  %s751_s18 = smov 0  }
   0x6 LB: > { %s766_s19 = sadd.s32 4294967295, %s707_s18   ;;  %s482_s20 = sadd.s32 4294967294, %s707_s18   ;;  %s707_s18 = sphi %s751_s18, %s995_s18   ;;  %s703_s17 = sphi %s749_s17, %s994_s17   ;;  %s699_s16 = sphi %s747_s16, %s993_s16   ;;  %s695_s15 = sphi %s745_s15, %s992_s15  }
   0x7   : > { %p42_p0 = scmp.ne.s32.totalorder %s699_s16, %s695_s15  ;;  %p971_p1 = scmp.eq.s32.totalorder %s766_s19, 0 }
   0x8   : > { %p93_p3 = scmp.eq.s32.totalorder %s482_s20, 1  ;;  %p483_p5 = scmp.ge.s32.totalorder %s707_s18, 1 }
   0x9   : > { %p775_p4 = por %p971_p1, %p42_p0  ;;  %p142_p7 = scmp.lt.s32.totalorder %s707_s18, 3 }
   0xa   : > { %p780_p6 = por %p93_p3, %p42_p0  ;;  %s709_s24 = smov [#allocation7]  }
   0xb   : > { %s974_s21 = scalar_select %p775_p4, 1, 0 }
   0xc   : > { %s975_s22 = scalar_select %p780_p6, 1, 0 }
   0xd   : > { %p786_p9 = pnand %p483_p5, %p142_p7  ;;  %s155_s25 = sshll.u32 %s709_s24, 4  ;;  %s156_s25 = int_to_ptr.vmem [resolvable:$true] %s155_s25 }
   0xe   : > { %s794_s26 = sadd.s32 1, %s707_s18   ;;  %s29_s30 = sadd.s32 1, %s703_s17 }
   0xf   : > { %s976_s23 = scalar_select %p786_p9, 1, 0 }
  0x10   : > { %p516_p11 = pneg %p786_p9  ;;  %s26_s28 = ssub.s32 %s707_s18, %s794_s26 }
  0x11   : > { %p804_p13 = scmp.eq.s32.totalorder %s26_s28, 0  ;;  %s579_s7 = scalar_lea.hbm %s967_s1, 64 }
  0x12   : > { %p798_p12 = pnand %p516_p11, %p971_p1  ;;  %p580_p3 = scmp.ne.s32.totalorder %s967_s1, %s579_s7 }
  0x13   : > { %s978_s29 = scalar_select %p804_p13, 1, 0 }
  0x14   : > { %p581_p5 = pneg %p798_p12  ;;  %p586_p10 = scmp.lt.u32.totalorder %s579_s7, %s967_s1 }
  0x16   : > { %p582_p7 = pnand %p581_p5, %p580_p3 }
  0x18   : > { %p583_p11 = pneg %p582_p7 }
  0x1a   : > { %p588_p8 = pnand %p586_p10, %p583_p11 }
  0x1c   : > { %591 = shalt.err (!%p588_p8)
}
  0x1d   : > { %s592_s12 = scalar_lea.vmem %s156_s25, 64  ;;  %p600_p6 = scmp.lt.s32.totalorder %s156_s25, %s156_s25 }
  0x1e   : > { %p593_p1 = scmp.ne.s32.totalorder %s156_s25, %s592_s12  ;;  %p601_p4 = scmp.lt.s32.totalorder %s592_s12, %s592_s12 }
  0x20   : > { %p595_p2 = pnand %p593_p1, %p581_p5  ;;  %p602_p9 = por %p601_p4, %p600_p6 }
  0x22   : > { %p596_p0 = pneg %p595_p2 }
  0x24   : > { %p603_p13 = pnand %p602_p9, %p596_p0 }
  0x26   : > { %606 = shalt.err (!%p603_p13)
}
  0x27   : > { %519 = dma.hbm_to_vmem [thread:$0]  (!%p798_p12), %s967_s1, 64, %s156_s25, [#allocation8]  }
  0x28   : > { %p979_p1 = scmp.ne.s32.totalorder %s978_s29, 0  ;;  %p37_p2 = scmp.eq.s32.totalorder %s707_s18, 0 }
  0x29   : > { %p980_p4 = scmp.ne.s32.totalorder %s703_s17, %s699_s16  ;;  %p981_p6 = scmp.eq.s32.totalorder %s766_s19, 1 }
  0x2a   : > { %s830_s20 = scalar_select %p979_p1, %s703_s17, %s29_s30  }
  0x2b   : > { %p838_p8 = por %p981_p6, %p980_p4  ;;  %p529_p9 = scmp.lt.s32.totalorder %s707_s18, 2 }
  0x2c   : > { %s166_s27 = sand.u32 1, %s703_s17   ;;  %p983_p10 = pmov %p980_p4 }
  0x2d   : > { %s486_s28 = sshll.u32 %s166_s27, 2  ;;  %s487_s5 = sshll.u32 %s707_s18, 6 }
  0x2e   : > { %p38_p13 = por %p37_p2, %p983_p10  ;;  %s851_s25 = scalar_lea.hbm %s966_s0, %s487_s5 }
  0x2f   : > { %s170_s29 = scalar_lea.vmem [#allocation4], %s486_s28  ;;  %s167_s9 = scalar_lea.sflag [#allocation5], %s166_s27 }
  0x30   : > { %s177_s30 = sshll.u32 %s170_s29, 4  ;;  %p853_p12 = pnand %p529_p9, %p38_p13  ;;  %s857_s30 = int_to_ptr.vmem [resolvable:$true] %s177_s30 }
  0x31   : > { %s607_s10 = scalar_lea.hbm %s851_s25, 64  ;;  %s612_s13 = scalar_lea.hbm %s966_s0, 128 }
  0x32   : > { %p608_p0 = scmp.ne.s32.totalorder %s851_s25, %s607_s10  ;;  %p609_p3 = pneg %p853_p12 }
  0x33   : > { %p613_p11 = scmp.lt.u32.totalorder %s851_s25, %s966_s0  ;;  %p614_p1 = scmp.lt.u32.totalorder %s612_s13, %s607_s10 }
  0x34   : > { %p610_p5 = pnand %p609_p3, %p608_p0  ;;  %p616_p4 = scmp.lt.u32.totalorder %s607_s10, %s851_s25 }
  0x35   : > { %p615_p2 = por %p614_p1, %p613_p11 }
  0x36   : > { %p611_p7 = pneg %p610_p5 }
  0x37   : > { %p617_p6 = por %p616_p4, %p615_p2 }
  0x39   : > { %p618_p9 = pnand %p617_p6, %p611_p7 }
  0x3b   : > { %621 = shalt.err (!%p618_p9)
}
  0x3c   : > { %s622_s27 = scalar_lea.vmem %s857_s30, 64  ;;  %s710_s5 = smov [#allocation4]  }
  0x3d   : > { %p623_p10 = scmp.ne.s32.totalorder %s857_s30, %s622_s27  ;;  %s627_s6 = sshll.u32 %s710_s5, 4  ;;  %s628_s6 = int_to_ptr.vmem [resolvable:$false] %s627_s6 }
  0x3e   : > { %s629_s7 = scalar_lea.vmem %s628_s6, 128  ;;  %p630_p5 = scmp.lt.s32.totalorder %s857_s30, %s628_s6 }
  0x3f   : > { %p625_p13 = pnand %p623_p10, %p609_p3  ;;  %p631_p11 = scmp.lt.s32.totalorder %s629_s7, %s622_s27 }
  0x41   : > { %p626_p0 = pneg %p625_p13  ;;  %p632_p1 = por %p631_p11, %p630_p5 }
  0x43   : > { %p633_p2 = pnand %p632_p1, %p626_p0 }
  0x45   : > { %636 = shalt.err (!%p633_p2)
}
  0x46   : > { %523 = dma.hbm_to_vmem [thread:$0]  (!%p853_p12), %s851_s25, 64, %s857_s30, %s167_s9  }
  0x47   : > { %p985_p7 = scmp.ne.s32.totalorder %s976_s23, 0 }
  0x48   : > { %s887_s29 = sand.u32 (!%p985_p7), 1, %s699_s16   ;;  %p986_p3 = scmp.ne.s32.totalorder (!%p985_p7), %s974_s21, 0 }
  0x49   : > { %186 = sbr.rel (%p985_p7) target bundleno = 759 (0x2f7), region = 28  ;;  %s489_s10 = sshll.u32 (!%p985_p7), %s887_s29, 2 }
  0x4a   : > { %s189_s11 = scalar_lea.sflag (!%p985_p7), [#allocation5], %s887_s29  ;;  %s192_s12 = scalar_lea.vmem (!%p985_p7), [#allocation4], %s489_s10 }
  0x50   : > { %682 = dma.done.wait (%p986_p3), %s189_s11, 64  }
  0x51   : > { %684 = vsyncadd (%p986_p3), %s189_s11, 4294967232  ;;  %p987_p4 = scmp.eq.s32.totalorder %s766_s19, 0 }
  0x53   : > { %686 = dma.done.wait (%p987_p4), [#allocation8], 64   ;;  %p988_p12 = pmov %p987_p4 }
  0x54   : > { %s491_s23 = sshll.u32 %s887_s29, 3  ;;  %p989_p6 = scmp.ne.s32.totalorder %s766_s19, 0 }
  0x55   : > { %688 = vsyncadd (%p988_p12), [#allocation8], 4294967232  ;;  %s900_s25 = scalar_lea.vmem [#allocation9], %s491_s23  ;;  %vm226_vm0 = vcmask (!%p989_p6), 156672   ;;  %vm228_vm1 = vcmask (!%p989_p6), 7168   ;;  %v711_v0 = vmov (!%p989_p6), 0  }
  0x56   : > { %225 = sbr.rel (%p989_p6) target bundleno = 93 (0x5d), region = 40  ;;  %227 = vst.msk [vmem:[#allocation2] sm:$0x3] (!%p989_p6), %vm226_vm0, %v711_v0  ;;  %v712_v1 = vmov (!%p989_p6), 0.0  }
  0x57   : > { %229 = vst.msk [vmem:[%s969_s3] sm:$0xff] (!%p989_p6), %vm228_vm1, %v712_v1  ;;  %230 = vst.msk [vmem:[%s970_s4] sm:$0xff] (!%p989_p6), %vm228_vm1, %v712_v1 }
  0x5d PF: > { %v231_v2 = vld [vmem:[%s192_s12] sm:$0xf]  ;;  %v713_v22 = vmov 1983009808   ;;  %v264_v24 = vlaneseq  ;;  %s714_s13 = smov 2   ;;  %vm271_vm3 = vcmask 140304  }
  0x5e   : > { %v233_v3 = vmul.f32 0.70710677, %v231_v2  ;;  %v262_v23 = vunpack.c.l.s4 %v713_v22  ;;  %v232_v27 = vmul.f32 0.5, %v231_v2  ;;  %v715_v37 = vmov 0.0   ;;  %s716_s14 = smov 124   ;;  %s718_s28 = smov 126  }
  0x5f   : > { %v265_v29 = vshrl.u32 %v264_v24, 7  ;;  %502 = vmatprep.subr.bf16.mxu0 %v715_v37  ;;  %vm274_vm4 = vcmask 123904   ;;  %vm717_vm5 = vmmov 0   ;;  %vm289_vm6 = vcmask 125954   ;;  %v304_v46 = vld [vmem:[#allocation7] sm:$0xf] }
  0x60   : > { %v234_v4 = vand.u32 2147483647, %v233_v3  ;;  %vm254_vm2 = vcmp.lt.f32.partialorder %v233_v3, 0.0  ;;  %v263_v28 = vunpack.c.0.s8 %v262_v23  ;;  %504 = vmatprep.mubr.msk.bf16.mxu0 %vm717_vm5, %v715_v37  ;;  %vm316_vm7 = vcmask 1045504   ;;  %s497_s27 = sshll.u32 %s766_s19, 7  ;;  %s390_s5 = sshll.u32 %s900_s25, 4  ;;  %s391_s5 = int_to_ptr.vmem [resolvable:$true] %s390_s5 }
  0x61   : > { %vm312_vm8 = vcmask 97280   ;;  %vm360_vm9 = vcmask 130048   ;;  %s916_s10 = scalar_lea.hbm %s968_s2, %s497_s27  ;;  %s377_s11 = scalar_lea.sflag [#allocation6], %s887_s29 }
  0x62   : > { %v235_v5 = vmul.f32 0.3275911, %v234_v4  ;;  %v248_v7 = vsub.f32 0.0, %v234_v4  ;;  %v266_v33 = vsub.s32 %v263_v28, %v265_v29  ;;  %s637_s12 = scalar_lea.vmem %s391_s5, 128  ;;  %s719_s23 = smov [#allocation9]  }
  0x63   : > { %p638_p9 = scmp.ne.s32.totalorder %s391_s5, %s637_s12  ;;  %s641_s21 = sshll.u32 %s719_s23, 4  ;;  %s642_s21 = int_to_ptr.vmem [resolvable:$false] %s641_s21 }
  0x64   : > { %v236_v6 = vadd.f32 1.0, %v235_v5  ;;  %v249_v8 = vmul.f32 %v248_v7, %v234_v4  ;;  %s643_s30 = scalar_lea.vmem %s642_s21, 256  ;;  %p644_p0 = scmp.lt.s32.totalorder %s391_s5, %s642_s21 }
  0x65   : > { %p639_p10 = pnand %p638_p9, %p838_p8  ;;  %p645_p5 = scmp.lt.s32.totalorder %s643_s30, %s637_s12 }
  0x66   : > { %575 = vrcp.f32 %v236_v6  ;;  %v250_v11 = vmul.f32 1.442695, %v249_v8 }
  0x67   : > { %p640_p13 = pneg %p639_p10  ;;  %p646_p11 = por %p645_p5, %p644_p0 }
  0x68   : > { %577 = vpow2.f32 %v250_v11 }
  0x69   : > { %p647_p1 = pnand %p646_p11, %p640_p13 }
  0x70   : > { %v576_v9 = vpop.eup %575 }
  0x71   : > { %v239_v10 = vmul.f32 1.0614054, %v576_v9 }
  0x72   : > { %v578_v19 = vpop.eup %577 }
  0x73   : > { %v240_v12 = vadd.f32 -1.4531521, %v239_v10 }
  0x75   : > { %v241_v13 = vmul.f32 %v576_v9, %v240_v12 }
  0x77   : > { %v242_v14 = vadd.f32 1.4214138, %v241_v13 }
  0x79   : > { %v243_v15 = vmul.f32 %v576_v9, %v242_v14 }
  0x7b   : > { %v244_v16 = vadd.f32 -0.28449672, %v243_v15 }
  0x7d   : > { %v245_v17 = vmul.f32 %v576_v9, %v244_v16 }
  0x7f   : > { %v246_v18 = vadd.f32 0.2548296, %v245_v17 }
  0x81   : > { %v247_v20 = vmul.f32 %v576_v9, %v246_v18 }
  0x83   : > { %v252_v21 = vmul.f32 %v578_v19, %v247_v20 }
  0x85   : > { %v253_v25 = vsub.f32 1.0, %v252_v21 }
  0x87   : > { %v255_v26 = vsub.f32 0.0, %v253_v25 }
  0x89   : > { %v256_v30 = vsel %vm254_vm2, %v255_v26, %v253_v25 }
  0x8a   : > { %v257_v31 = vadd.f32 1.0, %v256_v30 }
  0x8c   : > { %v258_v32 = vmul.f32 %v257_v31, %v232_v27 }
  0x8e   : > { %v259_v34 = vpack.c.bf16 %v258_v32, %v258_v32 }
  0x90   : > { %v267_v35 = vrot.slane %v259_v34, %v266_v33 }
  0x92   : > { %268 = vrot.lane.b32.xlu0 %v267_v35, %s714_s13 }
 0x104   : > { %v269_v36 = vpop.permute.xlu0 %268 }
 0x105   : > { %272 = vst.msk [vmem:[#allocation2] sm:$0x3] %vm271_vm3, %v269_v36 }
 0x10c   : > { %v493_v38 = vld.sshfl [vmem:[#allocation2] sm:$0x3 pattern:$0x76325410] }
 0x10d   : > { %300 = vrot.lane.b32.xlu1 %v493_v38, %s716_s14  ;;  %v573_v39 = vld [vmem:[#allocation2] ss:$0 sps:$4 sm:$0x33]  }
 0x10e   : > { %v273_v40 = vld [vmem:[#allocation2] sm:$0x3]  ;;  %v285_v41 = vrot.slane %v573_v39, %v266_v33 }
 0x10f   : > { %275 = vst.msk [vmem:[#allocation3] sm:$0x3] %vm274_vm4, %v273_v40 }
 0x110   : > { %286 = vrot.lane.b32.xlu0 %v285_v41, %s718_s28 }
 0x17f   : > { %v301_v42 = vpop.permute.xlu1 %300 }
 0x180   : > { %303 = vst.msk [vmem:[#allocation3 + $0x4] sm:$0x3] %vm274_vm4, %v301_v42 }
 0x182   : > { %v287_v43 = vpop.permute.xlu0 %286 }
 0x183   : > { %290 = vst.msk [vmem:[#allocation3] sm:$0xc] %vm289_vm6, %v287_v43 }
 0x18a   : > { %v574_v44 = vld [vmem:[#allocation3] sm:$0x3f]  }
 0x18b   : > { %v318_v45 = vsel %vm316_vm7, %v574_v44, 0 }
 0x18c   : > { %503 = vmatpush3.bf16.msra.mxu0 %v318_v45 }
 0x18f   : > { %505 = vmatmul.mubr.msk.bf16.vlgmr.msra.gmra.mrb[0].mxu0 %vm312_vm8, %v304_v46 }
 0x262   : > { %v354_v47 = vpop.f32.mrb[0].mxu0 }
 0x263   : > { %v506_v48 = vpop.f32.mrb[1].mxu0  ;;  %v363_v49 = vsel %vm360_vm9, %v354_v47, 0.0  ;;  %361 = vst.msk [vmem:[%s900_s25] sm:$0xff] %vm360_vm9, %v354_v47  ;;  %v370_v50 = vmul.f32 %v354_v47, %v354_v47 }
 0x264   : > { %364 = vadd.xlane.f32.xlu1 %v363_v49  ;;  %v357_v51 = vpop.f32.mrb[2].mxu0 }
 0x265   : > { %v507_v52 = vpop.f32.mrb[3].mxu0  ;;  %v371_v53 = vsel %vm360_vm9, %v370_v50, 0.0 }
 0x266   : > { %372 = vadd.xlane.f32.xlu0 %v371_v53 }
 0x267   : > { %650 = shalt.err (!%p647_p1)
}
 0x268   : > { %s651_s19 = scalar_lea.hbm %s916_s10, 128  ;;  %s655_s8 = scalar_lea.hbm %s968_s2, 256 }
 0x269   : > { %p652_p2 = scmp.ne.s32.totalorder %s916_s10, %s651_s19  ;;  %p656_p4 = scmp.lt.u32.totalorder %s916_s10, %s968_s2 }
 0x26a   : > { %p657_p12 = scmp.lt.u32.totalorder %s655_s8, %s651_s19  ;;  %p659_p9 = scmp.lt.u32.totalorder %s651_s19, %s916_s10 }
 0x26b   : > { %p653_p7 = pnand %p652_p2, %p838_p8 }
 0x26c   : > { %p658_p6 = por %p657_p12, %p656_p4 }
 0x26d   : > { %p654_p3 = pneg %p653_p7 }
 0x26e   : > { %p660_p10 = por %p659_p9, %p658_p6 }
 0x270   : > { %p661_p13 = pnand %p660_p10, %p654_p3 }
 0x272   : > { %664 = shalt.err (!%p661_p13)
}
 0x273   : > { %514 = dma.vmem_to_hbm [thread:$0]  (%p838_p8), %s391_s5, 128, %s916_s10, %s377_s11   ;;  %v362_v54 = vld [vmem:[%s969_s3] sm:$0xff]  ;;  %vm367_vm10 = vcmask 7168  }
 0x274   : > { %v369_v56 = vld [vmem:[%s970_s4] sm:$0xff] }
 0x2f1   : > { %v365_v55 = vpop.xlane.xlu1 %364 }
 0x2f2   : > { %v366_v57 = vadd.f32 %v365_v55, %v362_v54 }
 0x2f3   : > { %v373_v58 = vpop.xlane.xlu0 %372 }
 0x2f4   : > { %368 = vst.msk [vmem:[%s969_s3] sm:$0xff] %vm367_vm10, %v366_v57  ;;  %v374_v59 = vadd.f32 %v373_v58, %v369_v56 }
 0x2f6   : > { %375 = vst.msk [vmem:[%s970_s4] sm:$0xff] %vm367_vm10, %v374_v59 }
 0x2f7 PF: > { %s414_s5 = sand.u32 1, %s695_s15   ;;  %p990_p8 = scmp.ne.s32.totalorder %s975_s22, 0 }
 0x2f8   : > { %p991_p0 = scmp.ge.s32.totalorder %s707_s18, 2  ;;  %s415_s10 = scalar_lea.sflag [#allocation6], %s414_s5 }
 0x2fa   : > { %p525_p5 = pnand %p991_p0, %p990_p8 }
 0x2fc   : > { %690 = dma.done.wait (!%p525_p5), %s415_s10, 128  }
 0x2fd   : > { %692 = vsyncadd (!%p525_p5), %s415_s10, 4294967168  ;;  %p19_p11 = scmp.ge.s32.totalorder %s794_s26, 4   ;;  %s992_s15 = smov %s699_s16 }
 0x2fe   : > { %s993_s16 = smov %s703_s17  ;;  %s994_s17 = smov %s830_s20 }
 0x2ff   : > { %s995_s18 = smov %s794_s26  ;;  %21 = sbr.rel (!%p19_p11) target bundleno = 6 (0x6), region = 97 }
 0x306   :  { %420 = vsyncpa [#allocation5], 1 }
 0x307   :  { %422 = vsyncpa [#allocation5 + $0x1], 1 }
 0x308   :  { %423 = vsyncpa [#allocation8], 1 }
 0x309   :  { %424 = vsyncpa [#allocation6], 1 }
 0x30a   :  { %426 = vsyncpa [#allocation6 + $0x1], 1 }

</bundles_post_ra>
